<compile_context>
chip_gen: v5e
topology: v5e:2x2
jax: 0.10.0
libtpu: 0.0.40
codegen_flags: <defaults>
</compile_context>

<pallas_src>
import math
from functools import partial

import jax
import jax.numpy as jnp
from jax.experimental import pallas as pl
from jax.experimental.pallas import tpu as pltpu


# --- packed parameter slab layout (rows, cols) -------------------------------
#   [  0: 32, 0: 3]  W1 (32,3)      [  0: 32, 3: 4]  b1 (folded: input row 3 == 1)
#   [ 32: 64, 0:32]  W2 (32,32)     [ 32: 64,32:33]  b2
#   [ 64: 96, 0:32]  W3 (32,32)     [ 64: 96,32:33]  b3
#   [ 96:128, 0:32]  W4 (32,32)     [ 96:128,32:33]  b4
#   [128:129, 0:32]  W5 (1,32)      [128:129,32:33]  b5
SLAB_ROWS = 136   # multiple of 8 (sublane tile)
SLAB_COLS = 128   # one lane tile
FEAT_PAD = 4      # [hdg, bank, loc, 1.0] -> bias of layer 1 folded into matmul
LANE = 128
TB_MAX = 4096     # max batch tile (lanes) per grid step


def loc_model_kernel(x_ref, slab_ref, o_ref):
    # x_ref:    (4, TB)   rows 0:3 = [hdg, bank, loc], row 3 = 1.0 (bias lane)
    # slab_ref: (136, 128) packed weights/biases (resident across grid steps)
    # o_ref:    (1, TB)   lane-dense output tile
    h = x_ref[...]                                    # f32

    w1b = slab_ref[0:32, 0:4]                         # W1 with b1 in column 3
    w2 = slab_ref[32:64, 0:32]
    b2 = slab_ref[32:64, 32:33]
    w3 = slab_ref[64:96, 0:32]
    b3 = slab_ref[64:96, 32:33]
    w4 = slab_ref[96:128, 0:32]
    b4 = slab_ref[96:128, 32:33]
    w5 = slab_ref[128:129, 0:32]
    b5 = slab_ref[128:129, 32:33]

    h = jnp.maximum(jnp.dot(w1b, h, preferred_element_type=jnp.float32), 0.0)
    h = jnp.maximum(jnp.dot(w2, h, preferred_element_type=jnp.float32) + b2, 0.0)
    h = jnp.maximum(jnp.dot(w3, h, preferred_element_type=jnp.float32) + b3, 0.0)
    h = jnp.maximum(jnp.dot(w4, h, preferred_element_type=jnp.float32) + b4, 0.0)
    o_ref[...] = jnp.dot(w5, h, preferred_element_type=jnp.float32) + b5


def pack_params(params):
    """Pack the 5 (W, b) pairs (PyTorch (out, in) layout) into one VMEM slab.

    Call ONCE per set of weights and reuse the returned slab across forwards.
    """
    (w1, b1), (w2, b2), (w3, b3), (w4, b4), (w5, b5) = params
    slab = jnp.zeros((SLAB_ROWS, SLAB_COLS), jnp.float32)
    slab = slab.at[0:32, 0:3].set(w1)
    slab = slab.at[0:32, 3:4].set(b1[:, None])        # b1 folded (ones-row input)
    slab = slab.at[32:64, 0:32].set(w2)
    slab = slab.at[32:64, 32:33].set(b2[:, None])
    slab = slab.at[64:96, 0:32].set(w3)
    slab = slab.at[64:96, 32:33].set(b3[:, None])
    slab = slab.at[96:128, 0:32].set(w4)
    slab = slab.at[96:128, 32:33].set(b4[:, None])
    slab = slab.at[128:129, 0:32].set(w5)
    slab = slab.at[128:129, 32:33].set(b5[:, None])
    return slab


def _choose_tile(b_pad0, tb_max):
    """Pick batch tile tb (multiple of 128) and padded batch b_pad (multiple of tb)."""
    tb_max = max(LANE, (int(tb_max) // LANE) * LANE)  # force multiple of 128
    tb = min(tb_max, b_pad0)
    if b_pad0 >= 2 * LANE:
        # v7x megacore: keep >= 2 "parallel" grid steps so both TensorCores work.
        half = max(LANE, ((b_pad0 // 2) // LANE) * LANE)
        tb = min(tb, half)
    b_pad = ((b_pad0 + tb - 1) // tb) * tb
    return tb, b_pad


@partial(jax.jit, static_argnums=(2, 3))
def _forward_padded(x, slab, tb, b_pad):
    B = x.shape[0]
    # Transposed input (features, batch): rows 0:3 = x.T, row 3 = ones (bias lane).
    xt = jnp.zeros((FEAT_PAD, b_pad), jnp.float32)
    xt = xt.at[3, :].set(1.0)
    xt = xt.at[:3, :B].set(jnp.transpose(x).astype(jnp.float32))

    out = pl.pallas_call(
        loc_model_kernel,
        out_shape=jax.ShapeDtypeStruct((1, b_pad), jnp.float32),
        grid=(b_pad // tb,),
        in_specs=[
            pl.BlockSpec((FEAT_PAD, tb), lambda i: (0, i)),
            pl.BlockSpec((SLAB_ROWS, SLAB_COLS), lambda i: (0, 0)),  # resident slab
        ],
        out_specs=pl.BlockSpec((1, tb), lambda i: (0, i)),
        compiler_params=pltpu.CompilerParams(
            dimension_semantics=("parallel",)),
    )(xt, slab)

    return out[:, :B].T                               # (B, 1)


def loc_model_forward(x, slab, tb_max=TB_MAX):
    """x: (B, 3) float32, slab: packed params from pack_params() -> (B, 1)."""
    B = x.shape[0]
    b_pad0 = max(LANE, ((B + LANE - 1) // LANE) * LANE)
    tb, b_pad = _choose_tile(b_pad0, tb_max)
    return _forward_padded(x, slab, tb, b_pad)


# ----------------------------------------------------------------------------
# Deterministic parameter init matching LocModelNN.__init__:
#   weights: xavier_uniform_ ; biases: nn.Linear default U(-1/sqrt(fan_in), ..)
# Weights kept in PyTorch's (out, in) layout, biases as (out,).
# ----------------------------------------------------------------------------
def init_params(key):
    dims = [(3, 32), (32, 32), (32, 32), (32, 32), (32, 1)]
    params = []
    for (fan_in, fan_out) in dims:
        key, kw, kb = jax.random.split(key, 3)
        w_bound = math.sqrt(6.0 / (fan_in + fan_out))
        w = jax.random.uniform(kw, (fan_out, fan_in), jnp.float32,
                               minval=-w_bound, maxval=w_bound)
        b_bound = 1.0 / math.sqrt(fan_in)
        b = jax.random.uniform(kb, (fan_out,), jnp.float32,
                               minval=-b_bound, maxval=b_bound)
        params.append((w, b))
    return params


def reference_forward(x, params):
    h = x
    for i, (w, b) in enumerate(params):
        h = h @ w.T + b
        if i < len(params) - 1:
            h = jnp.maximum(h, 0.0)
    return h


# TODO(synk): CSVDataset / getDataset / splitDataset are host-side data plumbing
# (pandas + file I/O) with no Pallas equivalent; only the forward pass is ported.
if __name__ == "__main__":
    key = jax.random.PRNGKey(0)
    kp, kx1, kx2 = jax.random.split(key, 3)

    params = init_params(kp)
    slab = pack_params(params)            # packed once, reused across forwards

    # small shape consistent with the module: batch=8, features = [hdg, bank, loc]
    x_small = jax.random.normal(kx1, (8, 3), jnp.float32)
    y_small = jax.block_until_ready(loc_model_forward(x_small, slab))
    y_small_ref = reference_forward(x_small, params)
    assert y_small.shape == (8, 1)
    assert jnp.allclose(y_small, y_small_ref, atol=1e-4, rtol=1e-4)

    # exercise padding + a multi-step parallel grid (B=300 -> tb=128 -> 3 steps)
    x_big = jax.random.normal(kx2, (300, 3), jnp.float32)
    y_big = jax.block_until_ready(loc_model_forward(x_big, slab))
    y_big_ref = reference_forward(x_big, params)
    assert y_big.shape == (300, 1)
    assert jnp.allclose(y_big, y_big_ref, atol=1e-4, rtol=1e-4)

    print("KERNEL_OK")
</pallas_src>

<mosaic_0001>
module attributes {stable_mosaic.version = 11 : i64} {
  func.func @loc_model_kernel(%arg0: i32, %arg1: memref<4x128xf32, #tpu.memory_space<vmem>>, %arg2: memref<136x128xf32, #tpu.memory_space<vmem>>, %arg3: memref<1x128xf32, #tpu.memory_space<vmem>>) attributes {dimension_semantics = [#tpu.dimension_semantics<parallel>], iteration_bounds = array<i64: 1>, scalar_prefetch = 0 : i64, scratch_operands = 0 : i64, tpu.core_type = #tpu.core_type<tc>, window_params = [{transform_indices = @transform_0, window_bounds = array<i64: 4, 128>}, {pipeline_mode = #tpu.pipeline_mode<synchronous>, transform_indices = @transform_1, window_bounds = array<i64: 136, 128>}, {transform_indices = @transform_2, window_bounds = array<i64: 1, 128>}]} {
    %c0 = arith.constant 0 : index
    %c0_0 = arith.constant 0 : index
    %0 = vector.load %arg1[%c0, %c0_0] : memref<4x128xf32, #tpu.memory_space<vmem>>, vector<4x128xf32>
    %c0_1 = arith.constant 0 : index
    %c0_2 = arith.constant 0 : index
    %1 = vector.load %arg2[%c0_1, %c0_2] : memref<136x128xf32, #tpu.memory_space<vmem>>, vector<32x4xf32>
    %c32 = arith.constant 32 : index
    %c0_3 = arith.constant 0 : index
    %2 = vector.load %arg2[%c32, %c0_3] : memref<136x128xf32, #tpu.memory_space<vmem>>, vector<32x32xf32>
    %c32_4 = arith.constant 32 : index
    %c32_5 = arith.constant 32 : index
    %3 = vector.load %arg2[%c32_4, %c32_5] : memref<136x128xf32, #tpu.memory_space<vmem>>, vector<32x1xf32>
    %c64 = arith.constant 64 : index
    %c0_6 = arith.constant 0 : index
    %4 = vector.load %arg2[%c64, %c0_6] : memref<136x128xf32, #tpu.memory_space<vmem>>, vector<32x32xf32>
    %c64_7 = arith.constant 64 : index
    %c32_8 = arith.constant 32 : index
    %5 = vector.load %arg2[%c64_7, %c32_8] : memref<136x128xf32, #tpu.memory_space<vmem>>, vector<32x1xf32>
    %c96 = arith.constant 96 : index
    %c0_9 = arith.constant 0 : index
    %6 = vector.load %arg2[%c96, %c0_9] : memref<136x128xf32, #tpu.memory_space<vmem>>, vector<32x32xf32>
    %c96_10 = arith.constant 96 : index
    %c32_11 = arith.constant 32 : index
    %7 = vector.load %arg2[%c96_10, %c32_11] : memref<136x128xf32, #tpu.memory_space<vmem>>, vector<32x1xf32>
    %c128 = arith.constant 128 : index
    %c0_12 = arith.constant 0 : index
    %8 = vector.load %arg2[%c128, %c0_12] : memref<136x128xf32, #tpu.memory_space<vmem>>, vector<1x32xf32>
    %c128_13 = arith.constant 128 : index
    %c32_14 = arith.constant 32 : index
    %9 = vector.load %arg2[%c128_13, %c32_14] : memref<136x128xf32, #tpu.memory_space<vmem>>, vector<1x1xf32>
    %cst = arith.constant dense<0.000000e+00> : vector<32x128xf32>
    %10 = tpu.matmul %1, %0, %cst {dimension_numbers = #tpu.dot_dimension_numbers<[1], [0], [0], [1], [0, 0, 1, 1], [], []>} : vector<32x4xf32>, vector<4x128xf32>, vector<32x128xf32> -> vector<32x128xf32>
    %cst_15 = arith.constant 0.000000e+00 : f32
    %11 = vector.broadcast %cst_15 : f32 to vector<32x128xf32>
    %12 = arith.maximumf %10, %11 : vector<32x128xf32>
    %cst_16 = arith.constant dense<0.000000e+00> : vector<32x128xf32>
    %13 = tpu.matmul %2, %12, %cst_16 {dimension_numbers = #tpu.dot_dimension_numbers<[1], [0], [0], [1], [0, 0, 1, 1], [], []>} : vector<32x32xf32>, vector<32x128xf32>, vector<32x128xf32> -> vector<32x128xf32>
    %14 = vector.broadcast %3 : vector<32x1xf32> to vector<32x128xf32>
    %15 = arith.addf %13, %14 : vector<32x128xf32>
    %cst_17 = arith.constant 0.000000e+00 : f32
    %16 = vector.broadcast %cst_17 : f32 to vector<32x128xf32>
    %17 = arith.maximumf %15, %16 : vector<32x128xf32>
    %cst_18 = arith.constant dense<0.000000e+00> : vector<32x128xf32>
    %18 = tpu.matmul %4, %17, %cst_18 {dimension_numbers = #tpu.dot_dimension_numbers<[1], [0], [0], [1], [0, 0, 1, 1], [], []>} : vector<32x32xf32>, vector<32x128xf32>, vector<32x128xf32> -> vector<32x128xf32>
    %19 = vector.broadcast %5 : vector<32x1xf32> to vector<32x128xf32>
    %20 = arith.addf %18, %19 : vector<32x128xf32>
    %cst_19 = arith.constant 0.000000e+00 : f32
    %21 = vector.broadcast %cst_19 : f32 to vector<32x128xf32>
    %22 = arith.maximumf %20, %21 : vector<32x128xf32>
    %cst_20 = arith.constant dense<0.000000e+00> : vector<32x128xf32>
    %23 = tpu.matmul %6, %22, %cst_20 {dimension_numbers = #tpu.dot_dimension_numbers<[1], [0], [0], [1], [0, 0, 1, 1], [], []>} : vector<32x32xf32>, vector<32x128xf32>, vector<32x128xf32> -> vector<32x128xf32>
    %24 = vector.broadcast %7 : vector<32x1xf32> to vector<32x128xf32>
    %25 = arith.addf %23, %24 : vector<32x128xf32>
    %cst_21 = arith.constant 0.000000e+00 : f32
    %26 = vector.broadcast %cst_21 : f32 to vector<32x128xf32>
    %27 = arith.maximumf %25, %26 : vector<32x128xf32>
    %cst_22 = arith.constant dense<0.000000e+00> : vector<1x128xf32>
    %28 = tpu.matmul %8, %27, %cst_22 {dimension_numbers = #tpu.dot_dimension_numbers<[1], [0], [0], [1], [0, 0, 1, 1], [], []>} : vector<1x32xf32>, vector<32x128xf32>, vector<1x128xf32> -> vector<1x128xf32>
    %29 = vector.broadcast %9 : vector<1x1xf32> to vector<1x128xf32>
    %30 = arith.addf %28, %29 : vector<1x128xf32>
    %c0_23 = arith.constant 0 : index
    %c0_24 = arith.constant 0 : index
    %31 = vector.load %arg3[%c0_23, %c0_24] : memref<1x128xf32, #tpu.memory_space<vmem>>, vector<1x128xf32>
    tpu.vector_store %arg3[%c0_23, %c0_24], %30 {strides = array<i32>} : memref<1x128xf32, #tpu.memory_space<vmem>>, vector<1x128xf32>,
    return
  }
  func.func @transform_0(%arg0: i32) -> (i32, i32) {
    %c0_i32 = arith.constant 0 : i32
    %c0_i32_0 = arith.constant 0 : i32
    return %c0_i32, %arg0 : i32, i32
  }
  func.func @transform_1(%arg0: i32) -> (i32, i32) {
    %c0_i32 = arith.constant 0 : i32
    %c0_i32_0 = arith.constant 0 : i32
    %c0_i32_1 = arith.constant 0 : i32
    return %c0_i32, %c0_i32_0 : i32, i32
  }
  func.func @transform_2(%arg0: i32) -> (i32, i32) {
    %c0_i32 = arith.constant 0 : i32
    %c0_i32_0 = arith.constant 0 : i32
    return %c0_i32, %arg0 : i32, i32
  }
}

</mosaic_0001>

<bundles_post_ra>
// kernel: _forward_padded.1
= control target key start
LH: loop header
LB: loop body
LE: loop exit
PB: predicated region body
PF: predicated region fallthrough
CT: control target
= control target key end

     0   :  { %7 = vsyncpa [#allocation3], 0  ;;  %s363_s12 = smov [#allocation2]   ;;  %s364_s14 = smov 128   ;;  %s412_s0 = inlined_call_operand.vmem [shape: f32[4,128], index: 0, kind: input, shape index: {}]   ;;  %s413_s1 = inlined_call_operand.hbm [shape: f32[136,128], index: 1, kind: input, shape index: {}]   ;;  %s414_s2 = inlined_call_operand.vmem [shape: f32[1,128], index: 2, kind: output, shape index: {}]  }
   0x1   :  { %s14_s11 = sshll.u32 %s413_s1, 4  ;;  %s16_s13 = sshll.u32 %s363_s12, 4  ;;  %s15_s11 = int_to_ptr.hbm [resolvable:$true] %s14_s11  ;;  %s17_s13 = int_to_ptr.vmem [resolvable:$true] %s16_s13 }
   0x2   :  { %s365_s15 = smov 8  }
   0x3   :  { %22 = dma.hbm_to_vmem [thread:$0]  %s15_s11, 2176, %s17_s13, [#allocation3], %s364_s14, %s364_s14, %s365_s15  }
   0x4   :  { %361 = dma.done.wait [#allocation3], 2176  }
   0x5   :  { %362 = vsyncadd [#allocation3], 4294965120  ;;  %vm58_vm0 = vcmask 1043456   ;;  %vm45_vm1 = vcmask 31744   ;;  %v27_v0 = vld [vmem:[%s412_s0] sm:$0xf] }
   0x6   :  { %v28_v1 = vld [vmem:[#allocation2] sm:$0xff]  ;;  %312 = vmatpush.msk.msra.mxu0 %vm58_vm0, %v27_v0  ;;  %v29_v2 = vld [vmem:[#allocation2 + $0x8] sm:$0xff]  ;;  %v30_v3 = vld [vmem:[#allocation2 + $0x10] sm:$0xff]  ;;  %v366_v6 = vmov 32   ;;  %vm115_vm2 = vcmask 261120  }
   0x7   :  { %313 = vmatmul.msk.f32.vlgmr.msra.gmra.mxu0 %vm45_vm1, %v28_v1  ;;  %v31_v4 = vld [vmem:[#allocation2 + $0x18] sm:$0xff]  ;;  %334 = vset.pattern.permute.xlu0 %v366_v6  ;;  %v33_v8 = vld [vmem:[#allocation2 + $0x28] sm:$0xff]  ;;  %v34_v9 = vld [vmem:[#allocation2 + $0x30] sm:$0xff] }
   0x8   :  { %v35_v5 = vld [vmem:[#allocation2 + $0x38] sm:$0xff]  ;;  %335 = vset.pattern.permute.xlu1 %v366_v6  ;;  %336 = vset.pattern.permute.xlu2 %v366_v6  ;;  %v32_v11 = vld [vmem:[#allocation2 + $0x20] sm:$0xff]  ;;  %v37_v12 = vld [vmem:[#allocation2 + $0x48] sm:$0xff] }
   0x9   :  { %112 = vperm.xlu0 %334, %v35_v5   ;;  %102 = vperm.xlu1 %335, %v33_v8   ;;  %v388_v14 = vld [vmem:[#allocation2 + $0x70] sm:$0xff]  ;;  %v36_v17 = vld [vmem:[#allocation2 + $0x40] sm:$0xff]  ;;  %v41_v22 = vld [vmem:[#allocation2 + $0x68] sm:$0xff] }
   0xa   :  { %v391_v19 = vld [vmem:[#allocation2 + $0x80] sm:$0x1]  ;;  %v39_v28 = vld [vmem:[#allocation2 + $0x58] sm:$0xff]  ;;  %v38_v36 = vld [vmem:[#allocation2 + $0x50] sm:$0xff] }
   0xb   :  { %174 = vperm.xlu2 %336, %v39_v28   ;;  %v43_v41 = vld [vmem:[#allocation2 + $0x78] sm:$0xff]  ;;  %v40_v42 = vld [vmem:[#allocation2 + $0x60] sm:$0xff] }
   0xf   :  { %314 = vmatmul.msk.f32.gmra.mxu0 %vm45_vm1, %v29_v2 }
  0x11   :  { %107 = vperm.xlu0 %334, %v34_v9   ;;  %97 = vperm.xlu1 %335, %v32_v11  }
  0x13   :  { %169 = vperm.xlu2 %336, %v38_v36  }
  0x17   :  { %315 = vmatmul.msk.f32.gmra.mxu0 %vm45_vm1, %v30_v3 }
  0x19   :  { %164 = vperm.xlu0 %334, %v37_v12   ;;  %159 = vperm.xlu1 %335, %v36_v17  }
  0x1b   :  { %235 = vperm.xlu2 %336, %v43_v41  }
  0x1f   :  { %316 = vmatmul.msk.f32.gmra.mxu0 %vm45_vm1, %v31_v4 }
  0x21   :  { %230 = vperm.xlu0 %334, %v388_v14   ;;  %225 = vperm.xlu1 %335, %v41_v22  }
  0x23   :  { %220 = vperm.xlu2 %336, %v40_v42  }
  0x29   :  { %281 = vperm.xlu0 %334, %v391_v19  }
  0x65   :  { %v175_v45 = vpop.permute.xlu2 %174 }
  0x6d   :  { %v170_v47 = vpop.permute.xlu2 %169 }
  0x75   :  { %v236_v62 = vpop.permute.xlu2 %235 }
  0x7b   :  { %v113_v25 = vpop.permute.xlu0 %112  ;;  %v103_v26 = vpop.permute.xlu1 %102 }
  0x7d   :  { %v221_v6 = vpop.permute.xlu2 %220 }
  0x83   :  { %v108_v29 = vpop.permute.xlu0 %107  ;;  %v98_v33 = vpop.permute.xlu1 %97 }
  0x84   :  { %v79_v7 = vpop.f32.mrf.mxu0 }
  0x85   :  { %v91_v21 = vmax.f32 %v79_v7, 0.0 }
  0x8b   :  { %v165_v51 = vpop.permute.xlu0 %164  ;;  %v160_v54 = vpop.permute.xlu1 %159 }
  0x8c   :  { %v82_v10 = vpop.f32.mrf.mxu0 }
  0x8d   :  { %v92_v20 = vmax.f32 %v82_v10, 0.0 }
  0x93   :  { %v231_v63 = vpop.permute.xlu0 %230  ;;  %v226_v3 = vpop.permute.xlu1 %225 }
  0x94   :  { %v85_v13 = vpop.f32.mrf.mxu0 }
  0x95   :  { %v93_v18 = vmax.f32 %v85_v13, 0.0 }
  0x9c   :  { %v88_v15 = vpop.f32.mrf.mxu0 }
  0x9d   :  { %v94_v16 = vmax.f32 %v88_v15, 0.0 }
  0x9f   :  { %136 = vmatpush.msra.mxu1 %v94_v16 }
  0xa1   :  { %137 = vmatpush.msra.mxu1 %v93_v18 }
  0xa3   :  { %138 = vmatpush.msra.mxu1 %v92_v20 }
  0xa5   :  { %139 = vmatpush.msra.mxu1 %v91_v21 }
  0xa6   :  { %317 = vmatmul.msk.f32.vlgmr.msra.gmra.mxu1 %vm115_vm2, %v32_v11  ;;  %v282_v11 = vpop.permute.xlu0 %281 }
  0xae   :  { %318 = vmatmul.msk.f32.gmra.mxu1 %vm115_vm2, %v33_v8 }
  0xb6   :  { %319 = vmatmul.msk.f32.gmra.mxu1 %vm115_vm2, %v34_v9 }
  0xbe   :  { %320 = vmatmul.msk.f32.gmra.mxu1 %vm115_vm2, %v35_v5 }
 0x123   :  { %v141_v23 = vpop.f32.mrf.mxu1 }
 0x124   :  { %v142_v37 = vadd.f32 %v141_v23, %v98_v33 }
 0x126   :  { %v153_v40 = vmax.f32 %v142_v37, 0.0 }
 0x12b   :  { %v144_v24 = vpop.f32.mrf.mxu1 }
 0x12c   :  { %v145_v34 = vadd.f32 %v144_v24, %v103_v26 }
 0x12e   :  { %v154_v39 = vmax.f32 %v145_v34, 0.0 }
 0x133   :  { %v147_v27 = vpop.f32.mrf.mxu1 }
 0x134   :  { %v148_v31 = vadd.f32 %v147_v27, %v108_v29 }
 0x136   :  { %v155_v38 = vmax.f32 %v148_v31, 0.0 }
 0x13b   :  { %v150_v30 = vpop.f32.mrf.mxu1 }
 0x13c   :  { %v151_v32 = vadd.f32 %v150_v30, %v113_v25 }
 0x13e   :  { %v156_v35 = vmax.f32 %v151_v32, 0.0 }
 0x140   :  { %197 = vmatpush.msra.mxu2 %v156_v35 }
 0x142   :  { %198 = vmatpush.msra.mxu2 %v155_v38 }
 0x144   :  { %199 = vmatpush.msra.mxu2 %v154_v39 }
 0x146   :  { %200 = vmatpush.msra.mxu2 %v153_v40 }
 0x147   :  { %321 = vmatmul.msk.f32.vlgmr.msra.gmra.mxu2 %vm115_vm2, %v36_v17 }
 0x14f   :  { %322 = vmatmul.msk.f32.gmra.mxu2 %vm115_vm2, %v37_v12 }
 0x157   :  { %323 = vmatmul.msk.f32.gmra.mxu2 %vm115_vm2, %v38_v36 }
 0x15f   :  { %324 = vmatmul.msk.f32.gmra.mxu2 %vm115_vm2, %v39_v28 }
 0x1ca   :  { %v202_v43 = vpop.f32.mrf.mxu2 }
 0x1cb   :  { %v203_v55 = vadd.f32 %v202_v43, %v160_v54 }
 0x1cd   :  { %v214_v58 = vmax.f32 %v203_v55, 0.0 }
 0x1d2   :  { %v205_v44 = vpop.f32.mrf.mxu2 }
 0x1d3   :  { %v206_v52 = vadd.f32 %v205_v44, %v165_v51 }
 0x1d5   :  { %v215_v57 = vmax.f32 %v206_v52, 0.0 }
 0x1da   :  { %v208_v46 = vpop.f32.mrf.mxu2 }
 0x1db   :  { %v209_v49 = vadd.f32 %v208_v46, %v170_v47 }
 0x1dd   :  { %v216_v56 = vmax.f32 %v209_v49, 0.0 }
 0x1e2   :  { %v211_v48 = vpop.f32.mrf.mxu2 }
 0x1e3   :  { %v212_v50 = vadd.f32 %v211_v48, %v175_v45 }
 0x1e5   :  { %v217_v53 = vmax.f32 %v212_v50, 0.0 }
 0x1e7   :  { %258 = vmatpush.msra.mxu3 %v217_v53 }
 0x1e9   :  { %259 = vmatpush.msra.mxu3 %v216_v56 }
 0x1eb   :  { %260 = vmatpush.msra.mxu3 %v215_v57 }
 0x1ed   :  { %261 = vmatpush.msra.mxu3 %v214_v58 }
 0x1ee   :  { %325 = vmatmul.msk.f32.vlgmr.msra.gmra.mxu3 %vm115_vm2, %v40_v42 }
 0x1f6   :  { %326 = vmatmul.msk.f32.gmra.mxu3 %vm115_vm2, %v41_v22 }
 0x1fe   :  { %327 = vmatmul.msk.f32.gmra.mxu3 %vm115_vm2, %v388_v14 }
 0x206   :  { %328 = vmatmul.msk.f32.gmra.mxu3 %vm115_vm2, %v43_v41 }
 0x271   :  { %v263_v59 = vpop.f32.mrf.mxu3 }
 0x272   :  { %v264_v7 = vadd.f32 %v263_v59, %v221_v6 }
 0x274   :  { %v275_v10 = vmax.f32 %v264_v7, 0.0 }
 0x279   :  { %v266_v60 = vpop.f32.mrf.mxu3 }
 0x27a   :  { %v267_v4 = vadd.f32 %v266_v60, %v226_v3 }
 0x27c   :  { %v276_v9 = vmax.f32 %v267_v4, 0.0 }
 0x281   :  { %v269_v61 = vpop.f32.mrf.mxu3 }
 0x282   :  { %v270_v1 = vadd.f32 %v269_v61, %v231_v63 }
 0x284   :  { %v277_v8 = vmax.f32 %v270_v1, 0.0 }
 0x289   :  { %v272_v0 = vpop.f32.mrf.mxu3 }
 0x28a   :  { %v273_v2 = vadd.f32 %v272_v0, %v236_v62 }
 0x28c   :  { %v278_v5 = vmax.f32 %v273_v2, 0.0 }
 0x28e   :  { %298 = vmatpush.msrb.mxu0 %v278_v5 }
 0x290   :  { %299 = vmatpush.msrb.mxu0 %v277_v8 }
 0x292   :  { %300 = vmatpush.msrb.mxu0 %v276_v9 }
 0x294   :  { %301 = vmatpush.msrb.mxu0 %v275_v10 }
 0x295   :  { %329 = vmatmul.msk.f32.vlgmr.msrb.gmra.mxu0 %vm115_vm2, %v391_v19 }
 0x312   :  { %v303_v12 = vpop.f32.mrf.mxu0 }
 0x313   :  { %v304_v13 = vadd.f32 %v303_v12, %v282_v11 }
 0x315   :  { %306 = vst [vmem:[%s414_s2] sm:$0x1] %v304_v13 }
 0x316   :  { %311 = vsyncpa [#allocation3], 1 }

</bundles_post_ra>
